<compile_context>
chip_gen: v7x
topology: tpu7x:2x2x1
jax: 0.10.0
libtpu: 0.0.40
codegen_flags: <defaults>
</compile_context>

<pallas_src>
import numpy as np
import jax
import jax.numpy as jnp
from jax.experimental import pallas as pl
from jax.experimental.pallas import tpu as pltpu

LANE = 128
SUBLANE = 8


def _round_up(n, m):
    return (n + m - 1) // m * m


def _make_kernel(seq_len, seq_len_padded, batch_tile, compute_dtype):
    """Fused BasicBlock kernel for batch-aligned tiles of padded sequences."""
    # With batch_tile == 1 the zero rows concatenated at the tile edges already
    # zero the sequence boundaries, so the masks are pure VALU filler -> skip.
    need_first = batch_tile > 1
    need_last = (batch_tile > 1) or (seq_len_padded > seq_len)

    def kernel(x_ref, w1_ref, b1_ref, w2_ref, b2_ref, o_ref):
        # Input arrives at its native dtype (f32 or bf16); cast once in-kernel.
        x_f32 = x_ref[...].astype(jnp.float32)          # (TM, Cp)
        tm, cp = x_f32.shape

        not_first = not_last = None
        if need_first or need_last:
            # (TM, 1) f32 boundary masks, applied by lane-broadcast multiply.
            row = jax.lax.broadcasted_iota(jnp.int32, (tm, 1), 0) % seq_len_padded
            if need_first:
                not_first = (row != 0).astype(jnp.float32)
            if need_last:
                not_last = (row != seq_len - 1).astype(jnp.float32)

        zero_row = jnp.zeros((1, cp), jnp.float32)

        def conv_taps(h):
            # h: (TM, Cp) f32 -> (TM, 3*Cp) compute_dtype taps [h[l-1], h[l], h[l+1]].
            # TODO(synk): pltpu.roll(axis=0) would avoid the (TM+2, Cp) copy and
            # the unaligned sublane slice; concat+slice kept (proven lowering).
            hp = jnp.concatenate([zero_row, h, zero_row], axis=0)   # (TM+2, Cp)
            h_m1 = hp[0:tm]                                         # h[l-1]
            h_p1 = hp[2:tm + 2]                                     # h[l+1]
            if need_first:
                h_m1 = h_m1 * not_first
            if need_last:
                h_p1 = h_p1 * not_last
            # Wide buffer exists only in compute_dtype (lane-aligned concat).
            return jnp.concatenate([h_m1.astype(compute_dtype),
                                    h.astype(compute_dtype),
                                    h_p1.astype(compute_dtype)], axis=1)

        # conv1 (BN1 scale folded into w1) + shift + relu  -- one MXU push
        h1 = jnp.maximum(
            jnp.dot(conv_taps(x_f32), w1_ref[...],
                    preferred_element_type=jnp.float32) + b1_ref[...], 0.0)
        # conv2 (BN2 scale folded into w2) + shift + residual + relu
        out = jnp.dot(conv_taps(h1), w2_ref[...],
                      preferred_element_type=jnp.float32) + b2_ref[...]
        out = jnp.maximum(out + x_f32, 0.0)
        o_ref[...] = out.astype(o_ref.dtype)

    return kernel


def prepare_basic_block_params(w1, bn1, w2, bn2, *, eps=1e-5,
                               compute_dtype=jnp.bfloat16):
    """One-time (init-time) prep: fold BN scale into the conv weights, lay the
    k=3 taps out as a (3*Cp, Cp) matrix, zero-pad channels to a lane multiple,
    and cast to the compute dtype.  bn = (gamma, beta, running_mean, running_var)."""
    C = int(w1.shape[0])
    assert w1.shape == (C, C, 3) and w2.shape == (C, C, 3), \
        "stride=1 / downsample=None requires inplanes == planes and kernel_size == 3"
    Cp = _round_up(C, LANE)

    def fold(w, bn):
        g, b, m, v = (jnp.asarray(t, jnp.float32) for t in bn)
        scale = g / jnp.sqrt(v + eps)
        shift = b - m * scale
        # (Cout, Cin, 3) -> (3, Cin, Cout); fold BN scale into output channels.
        wt = jnp.transpose(jnp.asarray(w, jnp.float32), (2, 1, 0)) * scale[None, None, :]
        wt = jnp.pad(wt, ((0, 0), (0, Cp - C), (0, Cp - C)))
        # Shift stays zero-padded so padded output channels remain exactly 0.
        shift_p = jnp.pad(shift, (0, Cp - C)).reshape(1, Cp)
        return wt.reshape(3 * Cp, Cp).astype(compute_dtype), shift_p

    w1p, b1 = fold(w1, bn1)
    w2p, b2 = fold(w2, bn2)
    return {"w1": w1p, "b1": b1, "w2": w2p, "b2": b2,
            "C": C, "Cp": Cp, "compute_dtype": compute_dtype}


def _run_block(x_flat, params, *, B, L, Lp, out_dtype, batch_tile=None):
    """x_flat: (B*Lp, Cp), channel- and sequence-padded, any float dtype."""
    Cp = params["Cp"]
    compute_dtype = params["compute_dtype"]
    rows = B * Lp
    assert x_flat.shape == (rows, Cp)

    x_item = jnp.dtype(x_flat.dtype).itemsize
    o_item = jnp.dtype(out_dtype).itemsize
    c_item = jnp.dtype(compute_dtype).itemsize
    # Both (weight, shift) pairs, double-buffered by the pipeline.
    w_bytes = 2 * (2 * 3 * Cp * Cp * c_item + 2 * Cp * 4)

    def est_bytes(tm):
        io = 2 * tm * Cp * (x_item + o_item)          # double-buffered in/out blocks
        # f32 x / shift copies / conv1 out / accumulators (~24 B/elem) + bf16 taps.
        tmp = tm * Cp * (24 + 3 * c_item)
        return int(1.4 * (io + tmp)) + w_bytes

    # Generation-aware budget: ~64 MiB/TC on v7x, 128 MiB on v5e/v6e.
    try:
        vmem_cap = int(pltpu.get_tpu_info().vmem_capacity_bytes)
    except Exception:
        vmem_cap = 64 << 20                           # conservative (v7x per-TC)
    budget = int(0.55 * vmem_cap)
    rows_target = 512 if vmem_cap <= (96 << 20) else 2048

    if batch_tile is None:
        divisors = [d for d in range(1, B + 1) if B % d == 0]
        fitting = [d for d in divisors if est_bytes(d * Lp) <= budget] or [1]
        # Keep >= 2 grid steps when possible so both v7x TensorCores get work.
        multi = [d for d in fitting if B // d >= 2] or fitting
        under = [d for d in multi if d * Lp <= rows_target]
        TB = max(under) if under else min(multi)
    else:
        TB = batch_tile
        assert B % TB == 0
    TM = TB * Lp                                      # always a multiple of 8
    grid = (B // TB,)

    vmem_limit = int(min(max(2 * est_bytes(TM), 32 << 20), int(0.9 * vmem_cap)))

    inv = lambda shape: pl.BlockSpec(shape, lambda i: (0,) * len(shape))
    # TODO(synk): mark the grid-invariant specs below with
    # pipeline_mode=pl.Buffered(1) to drop their second VMEM buffer.

    out_flat = pl.pallas_call(
        _make_kernel(L, Lp, TB, compute_dtype),
        out_shape=jax.ShapeDtypeStruct((rows, Cp), out_dtype),
        grid_spec=pltpu.PrefetchScalarGridSpec(
            num_scalar_prefetch=0,
            grid=grid,
            in_specs=[
                pl.BlockSpec((TM, Cp), lambda i: (i, 0)),   # activations (B*Lp rows)
                inv((3 * Cp, Cp)),                          # w1 (BN1 scale folded in)
                inv((1, Cp)),                               # bn1 shift
                inv((3 * Cp, Cp)),                          # w2 (BN2 scale folded in)
                inv((1, Cp)),                               # bn2 shift
            ],
            out_specs=pl.BlockSpec((TM, Cp), lambda i: (i, 0)),
        ),
        compiler_params=pltpu.CompilerParams(
            dimension_semantics=("parallel",),
            vmem_limit_bytes=vmem_limit),
    )(x_flat, params["w1"], params["b1"], params["w2"], params["b2"])
    return out_flat


def basic_block_pallas_nlc(x_nlc, params, *, out_dtype=None, batch_tile=None):
    """x_nlc: (B, L, C).  Pads channels to a lane multiple and L to a multiple
    of 8, runs the fused block, slices back.  In a full model, keep activations
    in the padded (B*Lp, Cp) compute-dtype layout between blocks so the
    pad/reshape passes (and NCL<->NLC transposes) are paid once, not per block."""
    B, L, C = x_nlc.shape
    assert C == params["C"]
    Cp = params["Cp"]
    Lp = _round_up(L, SUBLANE)
    if out_dtype is None:
        out_dtype = params["compute_dtype"]
    x_p = jnp.pad(x_nlc, ((0, 0), (0, Lp - L), (0, Cp - C)))
    x_flat = x_p.reshape(B * Lp, Cp)        # fed at native dtype; cast in-kernel
    out_flat = _run_block(x_flat, params, B=B, L=L, Lp=Lp,
                          out_dtype=out_dtype, batch_tile=batch_tile)
    return out_flat.reshape(B, Lp, Cp)[:, :L, :C]


def basic_block_pallas(x_ncl, w1, bn1, w2, bn2, *, eps=1e-5,
                       compute_dtype=jnp.bfloat16, out_dtype=None,
                       batch_tile=None):
    """Drop-in PyTorch-layout (N, C, L) interface.  Prepares weights per call;
    in a real model call prepare_basic_block_params once at init and keep
    activations in padded NLC between blocks."""
    params = prepare_basic_block_params(w1, bn1, w2, bn2, eps=eps,
                                        compute_dtype=compute_dtype)
    out_nlc = basic_block_pallas_nlc(jnp.transpose(x_ncl, (0, 2, 1)), params,
                                     out_dtype=out_dtype, batch_tile=batch_tile)
    return jnp.transpose(out_nlc, (0, 2, 1))


def basic_block_ref(x, w1, bn1, w2, bn2, eps=1e-5):
    """Pure-JAX reference matching PyTorch semantics (eval-mode BN)."""
    def conv(x, w):
        return jax.lax.conv_general_dilated(
            x, w, window_strides=(1,), padding=((1, 1),),
            dimension_numbers=("NCH", "OIH", "NCH"))

    def bn(x, p):
        g, b, m, v = p
        return (x - m[None, :, None]) / jnp.sqrt(v[None, :, None] + eps) \
            * g[None, :, None] + b[None, :, None]

    out = jax.nn.relu(bn(conv(x, w1), bn1))
    out = bn(conv(out, w2), bn2)
    return jax.nn.relu(out + x)


if __name__ == "__main__":
    B, C, L = 2, 4, 16   # batch, inplanes=planes, sequence length

    key = jax.random.PRNGKey(0)
    k = jax.random.split(key, 8)
    x = jax.random.normal(k[0], (B, C, L), jnp.float32)
    w1 = jax.random.normal(k[1], (C, C, 3), jnp.float32) * 0.3
    w2 = jax.random.normal(k[2], (C, C, 3), jnp.float32) * 0.3
    bn1 = (jax.random.normal(k[3], (C,)) * 0.1 + 1.0,                 # gamma
           jax.random.normal(k[4], (C,)) * 0.1,                       # beta
           jax.random.normal(k[5], (C,)) * 0.1,                       # running_mean
           jax.nn.softplus(jax.random.normal(k[6], (C,))) + 0.5)      # running_var
    bn2 = (jnp.ones((C,)) * 0.9,
           jnp.ones((C,)) * 0.05,
           jax.random.normal(k[7], (C,)) * 0.1,
           jnp.ones((C,)) * 1.2)

    ref = basic_block_ref(x, w1, bn1, w2, bn2)

    # Exact-precision mode (f32 operands, f32 output) -> tight check.
    out_f32 = jax.block_until_ready(
        basic_block_pallas(x, w1, bn1, w2, bn2,
                           compute_dtype=jnp.float32, out_dtype=jnp.float32))
    np.testing.assert_allclose(np.asarray(out_f32), np.asarray(ref),
                               rtol=5e-5, atol=5e-5)

    # Performance mode (bf16 activations/weights/output, f32 MXU accumulation).
    out_bf16 = jax.block_until_ready(
        basic_block_pallas(x, w1, bn1, w2, bn2, compute_dtype=jnp.bfloat16))
    np.testing.assert_allclose(np.asarray(out_bf16.astype(jnp.float32)),
                               np.asarray(ref), rtol=5e-2, atol=5e-2)

    print("KERNEL_OK")
</pallas_src>

<mosaic_0001>
module attributes {stable_mosaic.version = 11 : i64} {
  func.func @kernel(%arg0: i32, %arg1: memref<16x128xf32, #tpu.memory_space<vmem>>, %arg2: memref<384x128xf32, #tpu.memory_space<vmem>>, %arg3: memref<1x128xf32, #tpu.memory_space<vmem>>, %arg4: memref<384x128xf32, #tpu.memory_space<vmem>>, %arg5: memref<1x128xf32, #tpu.memory_space<vmem>>, %arg6: memref<16x128xf32, #tpu.memory_space<vmem>>) attributes {dimension_semantics = [#tpu.dimension_semantics<parallel>], iteration_bounds = array<i64: 2>, scalar_prefetch = 0 : i64, scratch_operands = 0 : i64, tpu.core_type = #tpu.core_type<tc>, window_params = [{transform_indices = @transform_0, window_bounds = array<i64: 16, 128>}, {pipeline_mode = #tpu.pipeline_mode<synchronous>, transform_indices = @transform_1, window_bounds = array<i64: 384, 128>}, {pipeline_mode = #tpu.pipeline_mode<synchronous>, transform_indices = @transform_2, window_bounds = array<i64: 1, 128>}, {pipeline_mode = #tpu.pipeline_mode<synchronous>, transform_indices = @transform_3, window_bounds = array<i64: 384, 128>}, {pipeline_mode = #tpu.pipeline_mode<synchronous>, transform_indices = @transform_4, window_bounds = array<i64: 1, 128>}, {transform_indices = @transform_5, window_bounds = array<i64: 16, 128>}]} {
    %c0 = arith.constant 0 : index
    %c0_0 = arith.constant 0 : index
    %0 = vector.load %arg1[%c0, %c0_0] : memref<16x128xf32, #tpu.memory_space<vmem>>, vector<16x128xf32>
    %cst = arith.constant 0.000000e+00 : f32
    %1 = vector.broadcast %cst : f32 to vector<1x128xf32>
    %2 = tpu.concatenate %1, %0, %1 in 0 : vector<1x128xf32>, vector<16x128xf32>, vector<1x128xf32> -> vector<18x128xf32>
    %3 = vector.extract_strided_slice %2 {offsets = [0, 0], sizes = [16, 128], strides = [1, 1]} : vector<18x128xf32> to vector<16x128xf32>
    %4 = vector.extract_strided_slice %2 {offsets = [2, 0], sizes = [16, 128], strides = [1, 1]} : vector<18x128xf32> to vector<16x128xf32>
    %5 = tpu.concatenate %3, %0, %4 in 1 : vector<16x128xf32>, vector<16x128xf32>, vector<16x128xf32> -> vector<16x384xf32>
    %c0_1 = arith.constant 0 : index
    %c0_2 = arith.constant 0 : index
    %6 = vector.load %arg2[%c0_1, %c0_2] : memref<384x128xf32, #tpu.memory_space<vmem>>, vector<384x128xf32>
    %cst_3 = arith.constant dense<0.000000e+00> : vector<16x128xf32>
    %7 = tpu.matmul %5, %6, %cst_3 {dimension_numbers = #tpu.dot_dimension_numbers<[1], [0], [0], [1], [0, 0, 1, 1], [], []>} : vector<16x384xf32>, vector<384x128xf32>, vector<16x128xf32> -> vector<16x128xf32>
    %c0_4 = arith.constant 0 : index
    %c0_5 = arith.constant 0 : index
    %8 = vector.load %arg3[%c0_4, %c0_5] : memref<1x128xf32, #tpu.memory_space<vmem>>, vector<1x128xf32>
    %9 = vector.broadcast %8 : vector<1x128xf32> to vector<16x128xf32>
    %10 = arith.addf %7, %9 : vector<16x128xf32>
    %cst_6 = arith.constant 0.000000e+00 : f32
    %11 = vector.broadcast %cst_6 : f32 to vector<16x128xf32>
    %12 = arith.maximumf %10, %11 : vector<16x128xf32>
    %13 = tpu.concatenate %1, %12, %1 in 0 : vector<1x128xf32>, vector<16x128xf32>, vector<1x128xf32> -> vector<18x128xf32>
    %14 = vector.extract_strided_slice %13 {offsets = [0, 0], sizes = [16, 128], strides = [1, 1]} : vector<18x128xf32> to vector<16x128xf32>
    %15 = vector.extract_strided_slice %13 {offsets = [2, 0], sizes = [16, 128], strides = [1, 1]} : vector<18x128xf32> to vector<16x128xf32>
    %16 = tpu.concatenate %14, %12, %15 in 1 : vector<16x128xf32>, vector<16x128xf32>, vector<16x128xf32> -> vector<16x384xf32>
    %c0_7 = arith.constant 0 : index
    %c0_8 = arith.constant 0 : index
    %17 = vector.load %arg4[%c0_7, %c0_8] : memref<384x128xf32, #tpu.memory_space<vmem>>, vector<384x128xf32>
    %cst_9 = arith.constant dense<0.000000e+00> : vector<16x128xf32>
    %18 = tpu.matmul %16, %17, %cst_9 {dimension_numbers = #tpu.dot_dimension_numbers<[1], [0], [0], [1], [0, 0, 1, 1], [], []>} : vector<16x384xf32>, vector<384x128xf32>, vector<16x128xf32> -> vector<16x128xf32>
    %c0_10 = arith.constant 0 : index
    %c0_11 = arith.constant 0 : index
    %19 = vector.load %arg5[%c0_10, %c0_11] : memref<1x128xf32, #tpu.memory_space<vmem>>, vector<1x128xf32>
    %20 = vector.broadcast %19 : vector<1x128xf32> to vector<16x128xf32>
    %21 = arith.addf %18, %20 : vector<16x128xf32>
    %22 = arith.addf %21, %0 : vector<16x128xf32>
    %cst_12 = arith.constant 0.000000e+00 : f32
    %23 = vector.broadcast %cst_12 : f32 to vector<16x128xf32>
    %24 = arith.maximumf %22, %23 : vector<16x128xf32>
    %c0_13 = arith.constant 0 : index
    %c0_14 = arith.constant 0 : index
    %25 = vector.load %arg6[%c0_13, %c0_14] : memref<16x128xf32, #tpu.memory_space<vmem>>, vector<16x128xf32>
    tpu.vector_store %arg6[%c0_13, %c0_14], %24 {strides = array<i32>} : memref<16x128xf32, #tpu.memory_space<vmem>>, vector<16x128xf32>,
    return
  }
  func.func @transform_0(%arg0: i32) -> (i32, i32) {
    %c0_i32 = arith.constant 0 : i32
    %c0_i32_0 = arith.constant 0 : i32
    return %arg0, %c0_i32 : i32, i32
  }
  func.func @transform_1(%arg0: i32) -> (i32, i32) {
    %c0_i32 = arith.constant 0 : i32
    %c0_i32_0 = arith.constant 0 : i32
    %c0_i32_1 = arith.constant 0 : i32
    return %c0_i32, %c0_i32_0 : i32, i32
  }
  func.func @transform_2(%arg0: i32) -> (i32, i32) {
    %c0_i32 = arith.constant 0 : i32
    %c0_i32_0 = arith.constant 0 : i32
    %c0_i32_1 = arith.constant 0 : i32
    return %c0_i32, %c0_i32_0 : i32, i32
  }
  func.func @transform_3(%arg0: i32) -> (i32, i32) {
    %c0_i32 = arith.constant 0 : i32
    %c0_i32_0 = arith.constant 0 : i32
    %c0_i32_1 = arith.constant 0 : i32
    return %c0_i32, %c0_i32_0 : i32, i32
  }
  func.func @transform_4(%arg0: i32) -> (i32, i32) {
    %c0_i32 = arith.constant 0 : i32
    %c0_i32_0 = arith.constant 0 : i32
    %c0_i32_1 = arith.constant 0 : i32
    return %c0_i32, %c0_i32_0 : i32, i32
  }
  func.func @transform_5(%arg0: i32) -> (i32, i32) {
    %c0_i32 = arith.constant 0 : i32
    %c0_i32_0 = arith.constant 0 : i32
    return %arg0, %c0_i32 : i32, i32
  }
}

</mosaic_0001>

<bundles_post_ra>
// kernel: tpu_custom_call.1
= control target key start
LH: loop header
LB: loop body
LE: loop exit
PB: predicated region body
PF: predicated region fallthrough
CT: control target
= control target key end

     0   :  { %10 = vsyncpa [#allocation3], 0  ;;  %s1738_s0 = inlined_call_operand.hbm [shape: f32[32,128], index: 0, kind: input, shape index: {}]   ;;  %s1739_s1 = inlined_call_operand.hbm [shape: f32[384,128], index: 1, kind: input, shape index: {}]   ;;  %s1740_s2 = inlined_call_operand.vmem [shape: f32[1,128], index: 2, kind: input, shape index: {}]   ;;  %s1741_s3 = inlined_call_operand.hbm [shape: f32[384,128], index: 3, kind: input, shape index: {}]   ;;  %s1742_s4 = inlined_call_operand.vmem [shape: f32[1,128], index: 4, kind: input, shape index: {}]   ;;  %s1743_s5 = inlined_call_operand.hbm [shape: f32[32,128], index: 5, kind: output, shape index: {}]  }
   0x1   :  { %12 = vsyncpa [#allocation3 + $0x1], 0 }
   0x2   :  { %13 = vsyncpa [#allocation6], 0 }
   0x3   :  { %14 = vsyncpa [#allocation4], 0 }
   0x4   :  { %16 = vsyncpa [#allocation4 + $0x1], 0  ;;  %s1443_s18 = smov 0   ;;  %s1445_s19 = smov 0  }
   0x5   :  { %s1447_s20 = smov 0   ;;  %s1449_s21 = smov 0  }
   0x6 LB: > { %s1464_s22 = sadd.s32 4294967295, %s1403_s21   ;;  %s840_s23 = sadd.s32 4294967294, %s1403_s21   ;;  %s1403_s21 = sphi %s1449_s21, %s1765_s21   ;;  %s1399_s20 = sphi %s1447_s20, %s1764_s20   ;;  %s1395_s19 = sphi %s1445_s19, %s1763_s19   ;;  %s1391_s18 = sphi %s1443_s18, %s1762_s18  }
   0x7   : > { %p42_p0 = scmp.ne.s32.totalorder %s1395_s19, %s1391_s18  ;;  %p1744_p1 = scmp.eq.s32.totalorder %s1464_s22, 0 }
   0x8   : > { %p156_p3 = scmp.eq.s32.totalorder %s840_s23, 1  ;;  %p841_p5 = scmp.ge.s32.totalorder %s1403_s21, 1 }
   0x9   : > { %p1473_p4 = por %p1744_p1, %p42_p0  ;;  %p163_p7 = scmp.lt.s32.totalorder %s1403_s21, 3 }
   0xa   : > { %p1478_p6 = por %p156_p3, %p42_p0  ;;  %s1405_s27 = smov [#allocation5]  }
   0xb   : > { %s1747_s24 = scalar_select %p1473_p4, 1, 0 }
   0xc   : > { %s1748_s25 = scalar_select %p1478_p6, 1, 0 }
   0xd   : > { %p1483_p8 = pnand %p841_p5, %p163_p7  ;;  %s175_s28 = sshll.u32 %s1405_s27, 4  ;;  %s1487_s28 = int_to_ptr.vmem [resolvable:$true] %s175_s28 }
   0xe   : > { %s1406_s30 = smov [#allocation7]   ;;  %s1247_s9 = scalar_lea.hbm %s1739_s1, 6144 }
   0xf   : > { %p1188_p9 = pneg %p1483_p8  ;;  %s191_s6 = sshll.u32 %s1406_s30, 4  ;;  %s1498_s6 = int_to_ptr.vmem [resolvable:$true] %s191_s6 }
  0x10   : > { %p1248_p12 = scmp.ne.s32.totalorder %s1739_s1, %s1247_s9  ;;  %p1254_p5 = scmp.lt.u32.totalorder %s1247_s9, %s1739_s1 }
  0x11   : > { %p1494_p11 = pnand %p1188_p9, %p1744_p1 }
  0x13   : > { %p1249_p13 = pneg %p1494_p11 }
  0x15   : > { %p1250_p0 = pnand %p1249_p13, %p1248_p12 }
  0x17   : > { %p1251_p3 = pneg %p1250_p0 }
  0x19   : > { %p1256_p7 = pnand %p1254_p5, %p1251_p3 }
  0x1b   : > { %1259 = shalt.err (!%p1256_p7)
}
  0x1c   : > { %s1260_s14 = scalar_lea.vmem %s1487_s28, 6144  ;;  %p1268_p2 = scmp.lt.s32.totalorder %s1487_s28, %s1487_s28 }
  0x1d   : > { %p1261_p9 = scmp.ne.s32.totalorder %s1487_s28, %s1260_s14  ;;  %p1269_p12 = scmp.lt.s32.totalorder %s1260_s14, %s1260_s14 }
  0x1f   : > { %p1263_p10 = pnand %p1261_p9, %p1249_p13  ;;  %p1270_p0 = por %p1269_p12, %p1268_p2 }
  0x21   : > { %p1264_p1 = pneg %p1263_p10 }
  0x23   : > { %p1271_p6 = pnand %p1270_p0, %p1264_p1 }
  0x25   : > { %1274 = shalt.err (!%p1271_p6)
}
  0x26   : > { %s1407_s15 = smov 128   ;;  %s1408_s16 = smov 8  }
  0x27   : > { %1191 = dma.hbm_to_vmem [thread:$0]  (!%p1494_p11), %s1739_s1, 6144, %s1487_s28, [#allocation6], %s1407_s15, %s1407_s15, %s1408_s16  }
  0x28   : > { %s1275_s7 = scalar_lea.hbm %s1741_s3, 6144 }
  0x29   : > { %p1276_p1 = scmp.ne.s32.totalorder %s1741_s3, %s1275_s7  ;;  %p1282_p10 = scmp.lt.u32.totalorder %s1275_s7, %s1741_s3 }
  0x2b   : > { %p1278_p2 = pnand %p1276_p1, %p1249_p13 }
  0x2d   : > { %p1279_p6 = pneg %p1278_p2 }
  0x2f   : > { %p1284_p3 = pnand %p1282_p10, %p1279_p6 }
  0x31   : > { %1287 = shalt.err (!%p1284_p3)
}
  0x32   : > { %s1288_s28 = scalar_lea.vmem %s1498_s6, 6144  ;;  %p1296_p12 = scmp.lt.s32.totalorder %s1498_s6, %s1498_s6 }
  0x33   : > { %p1289_p5 = scmp.ne.s32.totalorder %s1498_s6, %s1288_s28  ;;  %p1297_p0 = scmp.lt.s32.totalorder %s1288_s28, %s1288_s28 }
  0x35   : > { %p1291_p7 = pnand %p1289_p5, %p1249_p13  ;;  %p1298_p1 = por %p1297_p0, %p1296_p12 }
  0x37   : > { %p1292_p9 = pneg %p1291_p7 }
  0x39   : > { %p1299_p2 = pnand %p1298_p1, %p1292_p9 }
  0x3b   : > { %1302 = shalt.err (!%p1299_p2)
}
  0x3c   : > { %1194 = dma.hbm_to_vmem [thread:$0]  (!%p1494_p11), %s1741_s3, 6144, %s1498_s6, [#allocation6], %s1407_s15, %s1407_s15, %s1408_s16  }
  0x3d   : > { %s1559_s29 = sadd.s32 1, %s1403_s21   ;;  %s29_s14 = sadd.s32 1, %s1399_s20 }
  0x3e   : > { %s26_s17 = ssub.s32 %s1403_s21, %s1559_s29  ;;  %p36_p13 = scmp.ne.s32.totalorder %s1399_s20, %s1395_s19 }
  0x3f   : > { %p27_p6 = scmp.eq.s32.totalorder %s26_s17, 0  ;;  %p37_p10 = scmp.eq.s32.totalorder %s1403_s21, 0 }
  0x40   : > { %p1751_p3 = scmp.eq.s32.totalorder %s1464_s22, 1  ;;  %p1205_p7 = scmp.lt.s32.totalorder %s1403_s21, 2 }
  0x41   : > { %s1575_s27 = scalar_select %p27_p6, %s1399_s20, %s29_s14  }
  0x42   : > { %p1569_p5 = por %p1751_p3, %p36_p13  ;;  %p38_p9 = por %p37_p10, %p36_p13 }
  0x43   : > { %s208_s30 = sand.u32 1, %s1399_s20   ;;  %s864_s6 = sshll.u32 %s1403_s21, 8 }
  0x44   : > { %s1752_s23 = scalar_select %p1569_p5, 1, 0 }
  0x45   : > { %s845_s7 = sshll.u32 %s208_s30, 4  ;;  %s1582_s10 = scalar_lea.hbm %s1738_s0, %s864_s6 }
  0x46   : > { %s212_s11 = scalar_lea.vmem [#allocation2], %s845_s7  ;;  %p1586_p11 = pnand %p1205_p7, %p38_p9 }
  0x47   : > { %s219_s28 = sshll.u32 %s212_s11, 4  ;;  %s1590_s13 = scalar_lea.sflag [#allocation3], %s208_s30  ;;  %s1584_s28 = int_to_ptr.vmem [resolvable:$true] %s219_s28 }
  0x48   : > { %s1303_s14 = scalar_lea.hbm %s1582_s10, 256  ;;  %p1305_p0 = pneg %p1586_p11 }
  0x49   : > { %p1304_p12 = scmp.ne.s32.totalorder %s1582_s10, %s1303_s14  ;;  %s1308_s6 = scalar_lea.hbm %s1738_s0, 512 }
  0x4a   : > { %p1309_p13 = scmp.lt.u32.totalorder %s1582_s10, %s1738_s0  ;;  %p1310_p6 = scmp.lt.u32.totalorder %s1308_s6, %s1303_s14 }
  0x4b   : > { %p1306_p1 = pnand %p1305_p0, %p1304_p12  ;;  %p1312_p3 = scmp.lt.u32.totalorder %s1303_s14, %s1582_s10 }
  0x4c   : > { %p1311_p10 = por %p1310_p6, %p1309_p13 }
  0x4d   : > { %p1307_p2 = pneg %p1306_p1 }
  0x4e   : > { %p1313_p7 = por %p1312_p3, %p1311_p10 }
  0x50   : > { %p1314_p9 = pnand %p1313_p7, %p1307_p2 }
  0x52   : > { %1317 = shalt.err (!%p1314_p9)
}
  0x53   : > { %s1318_s30 = scalar_lea.vmem %s1584_s28, 256  ;;  %s1409_s11 = smov [#allocation2]  }
  0x54   : > { %p1319_p12 = scmp.ne.s32.totalorder %s1584_s28, %s1318_s30  ;;  %s1323_s17 = sshll.u32 %s1409_s11, 4  ;;  %s1324_s17 = int_to_ptr.vmem [resolvable:$false] %s1323_s17 }
  0x55   : > { %s1325_s7 = scalar_lea.vmem %s1324_s17, 512  ;;  %p1326_p4 = scmp.lt.s32.totalorder %s1584_s28, %s1324_s17 }
  0x56   : > { %p1321_p1 = pnand %p1319_p12, %p1305_p0  ;;  %p1327_p13 = scmp.lt.s32.totalorder %s1325_s7, %s1318_s30 }
  0x58   : > { %p1322_p5 = pneg %p1321_p1  ;;  %p1328_p6 = por %p1327_p13, %p1326_p4 }
  0x5a   : > { %p1329_p10 = pnand %p1328_p6, %p1322_p5 }
  0x5c   : > { %1332 = shalt.err (!%p1329_p10)
}
  0x5d   : > { %1198 = dma.hbm_to_vmem [thread:$0]  (!%p1586_p11), %s1582_s10, 256, %s1584_s28, %s1590_s13, %s1407_s15, %s1407_s15, %s1408_s16  }
  0x5e   : > { %231 = sbr.rel (%p1483_p8) target bundleno = 606 (0x25e), region = 40  ;;  %s1624_s14 = sand.u32 (!%p1483_p8), 1, %s1395_s19  }
  0x5f   : > { %s849_s6 = sshll.u32 (!%p1483_p8), %s1624_s14, 4  ;;  %s234_s8 = scalar_lea.sflag (!%p1483_p8), [#allocation3], %s1624_s14 }
  0x60   : > { %s1630_s12 = scalar_lea.vmem (!%p1483_p8), [#allocation2], %s849_s6  ;;  %p1754_p4 = scmp.ne.s32.totalorder (!%p1483_p8), %s1747_s24, 0 }
  0x65   : > { %1378 = dma.done.wait (%p1754_p4), %s234_s8, 256  }
  0x66   : > { %1380 = vsyncadd (%p1754_p4), %s234_s8, 4294967040  ;;  %p1755_p5 = scmp.eq.s32.totalorder %s1464_s22, 0 }
  0x68   : > { %1382 = dma.done.wait (%p1755_p5), [#allocation6], 12288   ;;  %p1756_p8 = pmov %p1755_p5 }
  0x69   : > { %v313_v0 = vld [vmem:[#allocation5 + $0x80] sm:$0xff]  ;;  %v314_v1 = vld [vmem:[#allocation5 + $0x88] sm:$0xff]  ;;  %v315_v5 = vld [vmem:[#allocation5 + $0x90] sm:$0xff]  ;;  %vm278_vm0 = vcmask 1040384   ;;  %vm289_vm1 = vcmask 1045504   ;;  %s271_s10 = scalar_lea.vmem [#allocation8], %s849_s6 }
  0x6a   : > { %1384 = vsyncadd (%p1756_p8), [#allocation6], 4294955008  ;;  %v297_v2 = vld [vmem:[#allocation5] sm:$0xff]  ;;  %v1048_v3 = vpack.c.bf16 %v314_v1, %v313_v0  ;;  %v298_v4 = vld [vmem:[#allocation5 + $0x8] sm:$0xff]  ;;  %s748_s28 = sshll.u32 %s271_s10, 4  ;;  %s865_s13 = sshll.u32 %s1464_s22, 8  ;;  %s1688_s28 = int_to_ptr.vmem [resolvable:$true] %s748_s28 }
  0x6b   : > { %v316_v6 = vld [vmem:[#allocation5 + $0x98] sm:$0xff]  ;;  %v1050_v7 = vpack.c.bf16 %v298_v4, %v297_v2  ;;  %v329_v9 = vld [vmem:[#allocation5 + $0x100] sm:$0xff]  ;;  %v330_v10 = vld [vmem:[#allocation5 + $0x108] sm:$0xff]  ;;  %s1694_s11 = scalar_lea.hbm %s1743_s5, %s865_s13  ;;  %s735_s17 = scalar_lea.sflag [#allocation4], %s1624_s14 }
  0x6c   : > { %v1052_v8 = vpack.c.bf16 %v316_v6, %v315_v5  ;;  %v299_v11 = vld [vmem:[#allocation5 + $0x10] sm:$0xff]  ;;  %1049 = vmatprep.subr.bf16.mxu0 %v1048_v3  ;;  %v1080_v12 = vpack.c.bf16 %v330_v10, %v329_v9  ;;  %v300_v13 = vld [vmem:[#allocation5 + $0x18] sm:$0xff]  ;;  %v317_v14 = vld [vmem:[#allocation5 + $0xa0] sm:$0xff]  ;;  %s1333_s22 = scalar_lea.vmem %s1688_s28, 256  ;;  %p1759_p0 = scmp.ne.s32.totalorder %s1752_s23, 0 }
  0x6d   : > { %v318_v15 = vld [vmem:[#allocation5 + $0xa8] sm:$0xff]  ;;  %1051 = vmatpush3.bf16.msra.mxu0 %v1050_v7  ;;  %v1054_v16 = vpack.c.bf16 %v300_v13, %v299_v11  ;;  %v331_v17 = vld [vmem:[#allocation5 + $0x110] sm:$0xff]  ;;  %v332_v18 = vld [vmem:[#allocation5 + $0x118] sm:$0xff]  ;;  %p1334_p11 = scmp.ne.s32.totalorder %s1688_s28, %s1333_s22  ;;  %s1410_s7 = smov [#allocation8]  }
  0x6e   : > { %1053 = vmatprep.subr.bf16.mxu0 %v1052_v8  ;;  %1081 = vmatprep.subr.bf16.mxu1 %v1080_v12  ;;  %v1056_v19 = vpack.c.bf16 %v318_v15, %v317_v14  ;;  %v1084_v20 = vpack.c.bf16 %v332_v18, %v331_v17  ;;  %v301_v21 = vld [vmem:[#allocation5 + $0x20] sm:$0xff]  ;;  %v302_v22 = vld [vmem:[#allocation5 + $0x28] sm:$0xff]  ;;  %v319_v23 = vld [vmem:[#allocation5 + $0xb0] sm:$0xff]  ;;  %s1337_s6 = sshll.u32 %s1410_s7, 4  ;;  %s1338_s6 = int_to_ptr.vmem [resolvable:$false] %s1337_s6 }
  0x6f   : > { %1083 = vmatpush3.bf16.msra.mxu1 %v1080_v12  ;;  %v320_v24 = vld [vmem:[#allocation5 + $0xb8] sm:$0xff]  ;;  %v333_v25 = vld [vmem:[#allocation5 + $0x120] sm:$0xff]  ;;  %v334_v26 = vld [vmem:[#allocation5 + $0x128] sm:$0xff]  ;;  %v1058_v28 = vpack.c.bf16 %v302_v22, %v301_v21  ;;  %p1335_p2 = pnand %p1334_p11, %p1759_p0  ;;  %s1339_s8 = scalar_lea.vmem %s1338_s6, 512 }
  0x70   : > { %1085 = vmatprep.subr.bf16.mxu1 %v1084_v20  ;;  %v1088_v27 = vpack.c.bf16 %v334_v26, %v333_v25  ;;  %v335_v29 = vld [vmem:[#allocation5 + $0x130] sm:$0xff]  ;;  %v336_v30 = vld [vmem:[#allocation5 + $0x138] sm:$0xff]  ;;  %v1060_v31 = vpack.c.bf16 %v320_v24, %v319_v23  ;;  %v321_v34 = vld [vmem:[#allocation5 + $0xc0] sm:$0xff]  ;;  %p1340_p7 = scmp.lt.s32.totalorder %s1688_s28, %s1338_s6  ;;  %p1341_p9 = scmp.lt.s32.totalorder %s1339_s8, %s1333_s22 }
  0x71   : > { %1055 = vmatpush3.bf16.msra.mxu0 %v1054_v16  ;;  %v303_v32 = vld [vmem:[#allocation5 + $0x30] sm:$0xff]  ;;  %v304_v33 = vld [vmem:[#allocation5 + $0x38] sm:$0xff]  ;;  %v322_v35 = vld [vmem:[#allocation5 + $0xc8] sm:$0xff]  ;;  %v1092_v36 = vpack.c.bf16 %v336_v30, %v335_v29  ;;  %p1336_p3 = pneg %p1335_p2 }
  0x72   : > { %1057 = vmatprep.subr.bf16.mxu0 %v1056_v19  ;;  %v1062_v37 = vpack.c.bf16 %v304_v33, %v303_v32  ;;  %v337_v38 = vld [vmem:[#allocation5 + $0x140] sm:$0xff]  ;;  %v338_v39 = vld [vmem:[#allocation5 + $0x148] sm:$0xff]  ;;  %v1064_v40 = vpack.c.bf16 %v322_v35, %v321_v34  ;;  %v323_v43 = vld [vmem:[#allocation5 + $0xd0] sm:$0xff]  ;;  %p1342_p12 = por %p1341_p9, %p1340_p7 }
  0x73   : > { %1087 = vmatpush3.bf16.msra.mxu1 %v1084_v20  ;;  %v305_v41 = vld [vmem:[#allocation5 + $0x40] sm:$0xff]  ;;  %v306_v42 = vld [vmem:[#allocation5 + $0x48] sm:$0xff]  ;;  %v324_v44 = vld [vmem:[#allocation5 + $0xd8] sm:$0xff]  ;;  %v1096_v45 = vpack.c.bf16 %v338_v39, %v337_v38 }
  0x74   : > { %1089 = vmatprep.subr.bf16.mxu1 %v1088_v27  ;;  %v1641_v46 = vld [vmem:[%s1630_s12] sm:$0xff]  ;;  %v1066_v47 = vpack.c.bf16 %v306_v42, %v305_v41  ;;  %v340_v49 = vld [vmem:[#allocation5 + $0x158] sm:$0xff]  ;;  %v1068_v52 = vpack.c.bf16 %v324_v44, %v323_v43  ;;  %v326_v57 = vld [vmem:[#allocation5 + $0xe8] sm:$0xff]  ;;  %p1343_p1 = pnand %p1342_p12, %p1336_p3 }
  0x75   : > { %1059 = vmatpush3.bf16.msra.mxu0 %v1058_v28  ;;  %v339_v48 = vld [vmem:[#allocation5 + $0x150] sm:$0xff]  ;;  %v1644_v50 = vrot.slane %v1641_v46, 7  ;;  %416 = vmatprep.mubr.f32.mxu0 %v1641_v46  ;;  %v1648_v51 = vld [vmem:[%s1630_s12 + $0x8] sm:$0xff]  ;;  %v325_v56 = vld [vmem:[#allocation5 + $0xe0] sm:$0xff] }
  0x76   : > { %1061 = vmatprep.subr.bf16.mxu0 %v1060_v31  ;;  %v307_v53 = vld [vmem:[#allocation5 + $0x50] sm:$0xff]  ;;  %v308_v54 = vld [vmem:[#allocation5 + $0x58] sm:$0xff]  ;;  %v280_v55 = vrot.slane %v1648_v51, 7  ;;  %v1100_v59 = vpack.c.bf16 %v340_v49, %v339_v48  ;;  %v341_v63 = vld [vmem:[#allocation5 + $0x160] sm:$0xff]  ;;  %v1072_v2 = vpack.c.bf16 %v326_v57, %v325_v56 }
  0x77   : > { %1091 = vmatpush3.bf16.msra.mxu1 %v1088_v27  ;;  %v285_v58 = vsel %vm278_vm0, 0.0, %v1644_v50  ;;  %v1070_v62 = vpack.c.bf16 %v308_v54, %v307_v53  ;;  %v342_v0 = vld [vmem:[#allocation5 + $0x168] sm:$0xff]  ;;  %v309_v3 = vld [vmem:[#allocation5 + $0x60] sm:$0xff]  ;;  %v327_v5 = vld [vmem:[#allocation5 + $0xf0] sm:$0xff] }
  0x78   : > { %1093 = vmatprep.subr.bf16.mxu1 %v1092_v36  ;;  %v1655_v60 = vsel %vm278_vm0, %v1644_v50, %v280_v55  ;;  %v290_v61 = vrot.slane %v285_v58, 2  ;;  %v310_v4 = vld [vmem:[#allocation5 + $0x68] sm:$0xff]  ;;  %v328_v6 = vld [vmem:[#allocation5 + $0xf8] sm:$0xff]  ;;  %v1104_v8 = vpack.c.bf16 %v342_v0, %v341_v63  ;;  %v343_v10 = vld [vmem:[#allocation5 + $0x170] sm:$0xff]  ;;  %v286_v18 = vsel %vm278_vm0, %v280_v55, 0.0 }
  0x79   : > { %1063 = vmatpush3.bf16.msra.mxu0 %v1062_v37  ;;  %v291_v1 = vrot.slane %v1655_v60, 2  ;;  %v1074_v9 = vpack.c.bf16 %v310_v4, %v309_v3  ;;  %v344_v11 = vld [vmem:[#allocation5 + $0x178] sm:$0xff]  ;;  %v1076_v12 = vpack.c.bf16 %v328_v6, %v327_v5  ;;  %v311_v13 = vld [vmem:[#allocation5 + $0x70] sm:$0xff]  ;;  %v539_v15 = vld [vmem:[#allocation7 + $0x80] sm:$0xff]  ;;  %v293_v25 = vrot.slane %v286_v18, 2 }
  0x7a   : > { %1065 = vmatprep.subr.bf16.mxu0 %v1064_v40  ;;  %v312_v14 = vld [vmem:[#allocation5 + $0x78] sm:$0xff]  ;;  %v540_v16 = vld [vmem:[#allocation7 + $0x88] sm:$0xff]  ;;  %v1108_v17 = vpack.c.bf16 %v344_v11, %v343_v10  ;;  %v555_v20 = vld [vmem:[#allocation7 + $0x100] sm:$0xff] }
  0x7b   : > { %1095 = vmatpush3.bf16.msra.mxu1 %v1092_v36  ;;  %v292_v7 = vsel %vm289_vm1, %v290_v61, %v291_v1  ;;  %v1078_v19 = vpack.c.bf16 %v312_v14, %v311_v13  ;;  %v556_v21 = vld [vmem:[#allocation7 + $0x108] sm:$0xff]  ;;  %v1112_v22 = vpack.c.bf16 %v540_v16, %v539_v15  ;;  %v523_v23 = vld [vmem:[#allocation7] sm:$0xff]  ;;  %v541_v26 = vld [vmem:[#allocation7 + $0x90] sm:$0xff]  ;;  %v294_v36 = vsel %vm289_vm1, %v291_v1, %v293_v25 }
  0x7c   : > { %1097 = vmatprep.subr.bf16.mxu1 %v1096_v45  ;;  %1010 = vmatprep.mubr.f32.mxu1 %v292_v7  ;;  %v524_v24 = vld [vmem:[#allocation7 + $0x8] sm:$0xff]  ;;  %v542_v27 = vld [vmem:[#allocation7 + $0x98] sm:$0xff]  ;;  %v1144_v28 = vpack.c.bf16 %v556_v21, %v555_v20  ;;  %vm1661_vm2 = vmneg %vm278_vm0 }
  0x7d   : > { %1067 = vmatpush3.bf16.msra.mxu0 %v1066_v47  ;;  %v1114_v30 = vpack.c.bf16 %v524_v24, %v523_v23  ;;  %v557_v31 = vld [vmem:[#allocation7 + $0x110] sm:$0xff]  ;;  %v558_v32 = vld [vmem:[#allocation7 + $0x118] sm:$0xff]  ;;  %v1116_v33 = vpack.c.bf16 %v542_v27, %v541_v26  ;;  %v543_v37 = vld [vmem:[#allocation7 + $0xa0] sm:$0xff] }
  0x7e   : > { %1069 = vmatprep.subr.bf16.mxu0 %v1068_v52  ;;  %v525_v34 = vld [vmem:[#allocation7 + $0x10] sm:$0xff]  ;;  %v526_v35 = vld [vmem:[#allocation7 + $0x18] sm:$0xff]  ;;  %v544_v38 = vld [vmem:[#allocation7 + $0xa8] sm:$0xff]  ;;  %v1148_v39 = vpack.c.bf16 %v558_v32, %v557_v31 }
  0x7f   : > { %1099 = vmatpush3.bf16.msra.mxu1 %v1096_v45  ;;  %v1118_v40 = vpack.c.bf16 %v526_v35, %v525_v34  ;;  %v559_v41 = vld [vmem:[#allocation7 + $0x120] sm:$0xff]  ;;  %v560_v42 = vld [vmem:[#allocation7 + $0x128] sm:$0xff]  ;;  %v1120_v43 = vpack.c.bf16 %v544_v38, %v543_v37  ;;  %v545_v47 = vld [vmem:[#allocation7 + $0xb0] sm:$0xff] }
  0x80   : > { %1101 = vmatprep.subr.bf16.mxu1 %v1100_v59  ;;  %v527_v44 = vld [vmem:[#allocation7 + $0x20] sm:$0xff]  ;;  %v528_v45 = vld [vmem:[#allocation7 + $0x28] sm:$0xff]  ;;  %v546_v48 = vld [vmem:[#allocation7 + $0xb8] sm:$0xff]  ;;  %v1152_v49 = vpack.c.bf16 %v560_v42, %v559_v41 }
  0x81   : > { %1071 = vmatpush3.bf16.msra.mxu0 %v1070_v62  ;;  %v1124_v52 = vpack.c.bf16 %v546_v48, %v545_v47  ;;  %v529_v53 = vld [vmem:[#allocation7 + $0x30] sm:$0xff]  ;;  %v530_v54 = vld [vmem:[#allocation7 + $0x38] sm:$0xff]  ;;  %v547_v55 = vld [vmem:[#allocation7 + $0xc0] sm:$0xff] }
  0x82   : > { %1073 = vmatprep.subr.bf16.mxu0 %v1072_v2  ;;  %v548_v56 = vld [vmem:[#allocation7 + $0xc8] sm:$0xff]  ;;  %v1126_v57 = vpack.c.bf16 %v530_v54, %v529_v53  ;;  %v549_v62 = vld [vmem:[#allocation7 + $0xd0] sm:$0xff]  ;;  %v550_v63 = vld [vmem:[#allocation7 + $0xd8] sm:$0xff] }
  0x83   : > { %1103 = vmatpush3.bf16.msra.mxu1 %v1100_v59  ;;  %v1128_v58 = vpack.c.bf16 %v548_v56, %v547_v55  ;;  %v531_v59 = vld [vmem:[#allocation7 + $0x40] sm:$0xff]  ;;  %v532_v61 = vld [vmem:[#allocation7 + $0x48] sm:$0xff]  ;;  %v1132_v0 = vpack.c.bf16 %v550_v63, %v549_v62  ;;  %v533_v1 = vld [vmem:[#allocation7 + $0x50] sm:$0xff] }
  0x84   : > { %1105 = vmatprep.subr.bf16.mxu1 %v1104_v8  ;;  %v534_v2 = vld [vmem:[#allocation7 + $0x58] sm:$0xff]  ;;  %v561_v3 = vld [vmem:[#allocation7 + $0x130] sm:$0xff]  ;;  %v551_v7 = vld [vmem:[#allocation7 + $0xe0] sm:$0xff] }
  0x85   : > { %1075 = vmatpush3.bf16.msra.mxu0 %v1074_v9  ;;  %v1134_v4 = vpack.c.bf16 %v534_v2, %v533_v1  ;;  %v562_v5 = vld [vmem:[#allocation7 + $0x138] sm:$0xff]  ;;  %v535_v10 = vld [vmem:[#allocation7 + $0x60] sm:$0xff]  ;;  %v536_v11 = vld [vmem:[#allocation7 + $0x68] sm:$0xff] }
  0x86   : > { %1077 = vmatprep.subr.bf16.mxu0 %v1076_v12  ;;  %v1156_v6 = vpack.c.bf16 %v562_v5, %v561_v3  ;;  %v563_v12 = vld [vmem:[#allocation7 + $0x140] sm:$0xff]  ;;  %v1138_v13 = vpack.c.bf16 %v536_v11, %v535_v10  ;;  %v564_v14 = vld [vmem:[#allocation7 + $0x148] sm:$0xff]  ;;  %v553_v16 = vld [vmem:[#allocation7 + $0xf0] sm:$0xff] }
  0x87   : > { %1107 = vmatpush3.bf16.msra.mxu1 %v1104_v8  ;;  %v552_v8 = vld [vmem:[#allocation7 + $0xe8] sm:$0xff]  ;;  %v1160_v15 = vpack.c.bf16 %v564_v14, %v563_v12  ;;  %v538_v20 = vld [vmem:[#allocation7 + $0x78] sm:$0xff]  ;;  %v565_v21 = vld [vmem:[#allocation7 + $0x150] sm:$0xff] }
  0x88   : > { %1109 = vmatprep.subr.bf16.mxu1 %v1108_v17  ;;  %v1136_v9 = vpack.c.bf16 %v552_v8, %v551_v7  ;;  %v566_v23 = vld [vmem:[#allocation7 + $0x158] sm:$0xff]  ;;  %v567_v25 = vld [vmem:[#allocation7 + $0x160] sm:$0xff]  ;;  %v568_v26 = vld [vmem:[#allocation7 + $0x168] sm:$0xff] }
  0x89   : > { %1079 = vmatpush3.bf16.msra.mxu0 %v1078_v19  ;;  %v537_v19 = vld [vmem:[#allocation7 + $0x70] sm:$0xff]  ;;  %v1164_v24 = vpack.c.bf16 %v566_v23, %v565_v21  ;;  %v1168_v27 = vpack.c.bf16 %v568_v26, %v567_v25  ;;  %v853_v34 = vld [vmem:[%s1740_s2] ss:$0 sm:$0xff] }
  0x8a   : > { %1113 = vmatprep.subr.bf16.mxu0 %v1112_v22  ;;  %v1142_v22 = vpack.c.bf16 %v538_v20, %v537_v19  ;;  %v856_v63 = vld [vmem:[%s1742_s4] ss:$0 sm:$0xff] }
  0x8b   : > { %1111 = vmatpush3.bf16.msra.mxu1 %v1108_v17  ;;  %v554_v17 = vld [vmem:[#allocation7 + $0xf8] sm:$0xff] }
  0x8c   : > { %855 = vmatmul.mubr.msk.f32.vlgmr.msra.gmra.mrb[0].mxu0 %vm1661_vm2, %v1644_v50  ;;  %1145 = vmatprep.subr.bf16.mxu1 %v1144_v28  ;;  %v1122_v50 = vpack.c.bf16 %v528_v45, %v527_v44  ;;  %v1140_v18 = vpack.c.bf16 %v554_v17, %v553_v16 }
  0x8d   : > { %421 = vmatprep.mubr.f32.mxu0 %v1648_v51  ;;  %1115 = vmatpush3.bf16.msra.mxu0 %v1114_v30  ;;  %v570_v30 = vld [vmem:[#allocation7 + $0x178] sm:$0xff] }
  0x8e   : > { %1011 = vmatmul.mubr.f32.vlgmr.msra.gmra.mrb[0].mxu1 %v294_v36  ;;  %1117 = vmatprep.subr.bf16.mxu0 %v1116_v33 }
  0x8f   : > { %1147 = vmatpush3.bf16.msra.mxu1 %v1144_v28  ;;  %v569_v28 = vld [vmem:[#allocation7 + $0x170] sm:$0xff] }
  0x90   : > { %422 = vmatmul.mubr.f32.gmra.mrb[2].mxu0 %v1655_v60  ;;  %1149 = vmatprep.subr.bf16.mxu1 %v1148_v39  ;;  %v1130_v60 = vpack.c.bf16 %v532_v61, %v531_v59  ;;  %v1172_v31 = vpack.c.bf16 %v570_v30, %v569_v28 }
  0x91   : > { %1119 = vmatpush3.bf16.msra.mxu0 %v1118_v40 }
  0x92   : > { %1121 = vmatprep.subr.bf16.mxu0 %v1120_v43 }
  0x93   : > { %1151 = vmatpush3.bf16.msra.mxu1 %v1148_v39 }
  0x94   : > { %1153 = vmatprep.subr.bf16.mxu1 %v1152_v49 }
  0x95   : > { %1123 = vmatpush3.bf16.msra.mxu0 %v1122_v50 }
  0x96   : > { %1125 = vmatprep.subr.bf16.mxu0 %v1124_v52 }
  0x97   : > { %1155 = vmatpush3.bf16.msra.mxu1 %v1152_v49 }
  0x98   : > { %1157 = vmatprep.subr.bf16.mxu1 %v1156_v6 }
  0x99   : > { %1127 = vmatpush3.bf16.msra.mxu0 %v1126_v57 }
  0x9a   : > { %1129 = vmatprep.subr.bf16.mxu0 %v1128_v58 }
  0x9b   : > { %1159 = vmatpush3.bf16.msra.mxu1 %v1156_v6 }
  0x9c   : > { %1161 = vmatprep.subr.bf16.mxu1 %v1160_v15 }
  0x9d   : > { %1131 = vmatpush3.bf16.msra.mxu0 %v1130_v60 }
  0x9e   : > { %1133 = vmatprep.subr.bf16.mxu0 %v1132_v0 }
  0x9f   : > { %1163 = vmatpush3.bf16.msra.mxu1 %v1160_v15 }
  0xa0   : > { %1165 = vmatprep.subr.bf16.mxu1 %v1164_v24 }
  0xa1   : > { %1135 = vmatpush3.bf16.msra.mxu0 %v1134_v4 }
  0xa2   : > { %1137 = vmatprep.subr.bf16.mxu0 %v1136_v9 }
  0xa3   : > { %1167 = vmatpush3.bf16.msra.mxu1 %v1164_v24 }
  0xa4   : > { %1169 = vmatprep.subr.bf16.mxu1 %v1168_v27 }
  0xa5   : > { %1139 = vmatpush3.bf16.msra.mxu0 %v1138_v13 }
  0xa6   : > { %1141 = vmatprep.subr.bf16.mxu0 %v1140_v18 }
  0xa7   : > { %1171 = vmatpush3.bf16.msra.mxu1 %v1168_v27 }
  0xa8   : > { %1173 = vmatprep.subr.bf16.mxu1 %v1172_v31 }
  0xa9   : > { %1143 = vmatpush3.bf16.msra.mxu0 %v1142_v22 }
  0xab   : > { %1175 = vmatpush3.bf16.msra.mxu1 %v1172_v31 }
 0x15f   : > { %v898_v32 = vpop.f32.mrb[0].mxu0 }
 0x160   : > { %v899_v33 = vpop.f32.mrb[1].mxu0 }
 0x161   : > { %v900_v35 = vadd.f32 %v899_v33, %v898_v32  ;;  %v1012_v36 = vpop.f32.mrb[0].mxu1 }
 0x162   : > { %v493_v37 = vpop.f32.mrb[1].mxu1 }
 0x163   : > { %v901_v38 = vpop.f32.mrb[2].mxu0  ;;  %v419_v39 = vadd.f32 %v900_v35, %v853_v34 }
 0x164   : > { %v902_v40 = vpop.f32.mrb[3].mxu0 }
 0x165   : > { %v903_v41 = vadd.f32 %v902_v40, %v901_v38  ;;  %v494_v42 = vadd.f32 %v493_v37, %v419_v39 }
 0x167   : > { %v424_v43 = vadd.f32 %v903_v41, %v853_v34  ;;  %v502_v44 = vmax.f32 %v494_v42, 0.0 }
 0x169   : > { %v506_v45 = vrot.slane %v502_v44, 7  ;;  %642 = vmatprep.mubr.f32.mxu0 %v502_v44  ;;  %v499_v47 = vadd.f32 %v1012_v36, %v424_v43 }
 0x16b   : > { %858 = vmatmul.mubr.msk.f32.vlgmr.msra.gmra.mrb[4].mxu0 %vm1661_vm2, %v506_v45  ;;  %v503_v48 = vmax.f32 %v499_v47, 0.0  ;;  %v512_v50 = vsel %vm278_vm0, 0.0, %v506_v45 }
 0x16c   : > { %v516_v55 = vrot.slane %v512_v50, 2 }
 0x16d   : > { %v507_v49 = vrot.slane %v503_v48, 7  ;;  %647 = vmatprep.mubr.f32.mxu0 %v503_v48 }
 0x16f   : > { %v513_v52 = vsel %vm278_vm0, %v507_v49, 0.0  ;;  %v508_v53 = vsel %vm278_vm0, %v506_v45, %v507_v49 }
 0x170   : > { %v517_v54 = vrot.slane %v508_v53, 2  ;;  %648 = vmatmul.mubr.f32.gmra.mrb[6].mxu0 %v508_v53  ;;  %v519_v56 = vrot.slane %v513_v52, 2 }
 0x172   : > { %v518_v57 = vsel %vm289_vm1, %v516_v55, %v517_v54  ;;  %v520_v58 = vsel %vm289_vm1, %v517_v54, %v519_v56 }
 0x173   : > { %1045 = vmatprep.mubr.f32.mxu1 %v518_v57 }
 0x174   : > { %1046 = vmatmul.mubr.f32.vlgmr.msra.gmra.mrb[2].mxu1 %v520_v58 }
 0x23e   : > { %v954_v29 = vpop.f32.mrb[4].mxu0 }
 0x23f   : > { %v955_v59 = vpop.f32.mrb[5].mxu0 }
 0x240   : > { %v956_v61 = vadd.f32 %v955_v59, %v954_v29 }
 0x242   : > { %v645_v3 = vadd.f32 %v956_v61, %v856_v63 }
 0x243   : > { %v957_v60 = vpop.f32.mrb[6].mxu0 }
 0x244   : > { %v958_v62 = vpop.f32.mrb[7].mxu0 }
 0x245   : > { %v959_v0 = vadd.f32 %v958_v62, %v957_v60 }
 0x247   : > { %v650_v1 = vadd.f32 %v959_v0, %v856_v63  ;;  %v1047_v2 = vpop.f32.mrb[2].mxu1 }
 0x248   : > { %v719_v4 = vpop.f32.mrb[3].mxu1 }
 0x249   : > { %v725_v5 = vadd.f32 %v1047_v2, %v650_v1  ;;  %v720_v6 = vadd.f32 %v719_v4, %v645_v3 }
 0x24b   : > { %v729_v7 = vadd.f32 %v725_v5, %v1648_v51  ;;  %v728_v8 = vadd.f32 %v720_v6, %v1641_v46 }
 0x24d   : > { %v731_v9 = vmax.f32 %v729_v7, 0.0  ;;  %v730_v10 = vmax.f32 %v728_v8, 0.0 }
 0x24f   : > { %733 = vst [vmem:[%s271_s10 + $0x8] sm:$0xff] %v731_v9  ;;  %732 = vst [vmem:[%s271_s10] sm:$0xff] %v730_v10 }
 0x250   : > { %1346 = shalt.err (!%p1343_p1)
}
 0x251   : > { %s1347_s12 = scalar_lea.hbm %s1694_s11, 256  ;;  %s1351_s15 = scalar_lea.hbm %s1743_s5, 512 }
 0x252   : > { %p1348_p13 = scmp.ne.s32.totalorder %s1694_s11, %s1347_s12  ;;  %p1352_p4 = scmp.lt.u32.totalorder %s1694_s11, %s1743_s5 }
 0x253   : > { %p1353_p5 = scmp.lt.u32.totalorder %s1351_s15, %s1347_s12  ;;  %p1355_p11 = scmp.lt.u32.totalorder %s1347_s12, %s1694_s11 }
 0x254   : > { %p1349_p6 = pnand %p1348_p13, %p1759_p0 }
 0x255   : > { %p1354_p8 = por %p1353_p5, %p1352_p4 }
 0x256   : > { %p1350_p10 = pneg %p1349_p6 }
 0x257   : > { %p1356_p2 = por %p1355_p11, %p1354_p8 }
 0x259   : > { %p1357_p3 = pnand %p1356_p2, %p1350_p10 }
 0x25b   : > { %1360 = shalt.err (!%p1357_p3)
}
 0x25c   : > { %s1411_s13 = smov 128   ;;  %s1412_s9 = smov 8  }
 0x25d   : > { %1186 = dma.vmem_to_hbm [thread:$0]  (%p1759_p0), %s1688_s28, 256, %s1694_s11, %s735_s17, %s1411_s13, %s1411_s13, %s1412_s9  }
 0x25e PF: > { %s763_s30 = sand.u32 1, %s1391_s18   ;;  %p1760_p7 = scmp.ne.s32.totalorder %s1748_s25, 0 }
 0x25f   : > { %p1761_p9 = scmp.ge.s32.totalorder %s1403_s21, 2  ;;  %s764_s22 = scalar_lea.sflag [#allocation4], %s763_s30 }
 0x261   : > { %p1200_p12 = pnand %p1761_p9, %p1760_p7 }
 0x263   : > { %1386 = dma.done.wait (!%p1200_p12), %s764_s22, 256  }
 0x264   : > { %1388 = vsyncadd (!%p1200_p12), %s764_s22, 4294967040  ;;  %p19_p1 = scmp.ge.s32.totalorder %s1559_s29, 4   ;;  %s1762_s18 = smov %s1395_s19 }
 0x265   : > { %s1763_s19 = smov %s1399_s20  ;;  %s1764_s20 = smov %s1575_s27 }
 0x266   : > { %s1765_s21 = smov %s1559_s29  ;;  %21 = sbr.rel (!%p19_p1) target bundleno = 6 (0x6), region = 93 }
 0x26d   :  { %769 = vsyncpa [#allocation3], 1 }
 0x26e   :  { %771 = vsyncpa [#allocation3 + $0x1], 1 }
 0x26f   :  { %772 = vsyncpa [#allocation6], 1 }
 0x270   :  { %773 = vsyncpa [#allocation4], 1 }
 0x271   :  { %775 = vsyncpa [#allocation4 + $0x1], 1 }

</bundles_post_ra>
